<compile_context>
chip_gen: v5e
topology: v5e:2x2
jax: 0.10.0
libtpu: 0.0.40
codegen_flags: <defaults>
</compile_context>

<pallas_src>
import jax
import jax.numpy as jnp
from jax import lax
from jax.experimental import pallas as pl
from jax.experimental.pallas import tpu as pltpu


def _round_up(x: int, m: int) -> int:
    return ((x + m - 1) // m) * m


# ---------------------------------------------------------------------------
# Pass 1a: H1 = alpha * tanh(E1 @ W1.T)     (row-tiled, f32 compute, bf16 out)
# ---------------------------------------------------------------------------
def _proj_tanh_kernel(alpha_ref, e_ref, w_ref, h_ref):
    # e_ref: (tile_m, d_pad) f32, w_ref: (d_pad, d_pad) f32 (PyTorch out x in).
    x = lax.dot_general(
        e_ref[...], w_ref[...],
        dimension_numbers=(((1,), (1,)), ((), ())),   # e @ W.T
        preferred_element_type=jnp.float32,
    )
    h_ref[...] = (alpha_ref[0] * jnp.tanh(x)).astype(h_ref.dtype)


# ---------------------------------------------------------------------------
# Pass 1b: H2t tile = alpha * tanh(W2 @ E2_tile.T)  -> (d_pad, tile_n) bf16
# (pre-transposed so the logits matmul is a plain [M,K] x [K,N] contraction)
# ---------------------------------------------------------------------------
def _proj_tanh_t_kernel(alpha_ref, e_ref, w_ref, ht_ref):
    xT = lax.dot_general(
        w_ref[...], e_ref[...],
        dimension_numbers=(((1,), (1,)), ((), ())),   # (e @ W.T).T
        preferred_element_type=jnp.float32,
    )
    ht_ref[...] = (alpha_ref[0] * jnp.tanh(xT)).astype(ht_ref.dtype)


# ---------------------------------------------------------------------------
# Pass 2: logits tile = H1_tile @ H2t_tile          (bf16 in, f32 acc)
# ---------------------------------------------------------------------------
def _logits_kernel(h1_ref, h2t_ref, o_ref):
    o_ref[...] = jnp.dot(
        h1_ref[...], h2t_ref[...], preferred_element_type=jnp.float32
    ).astype(o_ref.dtype)


def graph_sampling_logits(emb1, w1, emb2, w2, alpha, *, out_dtype=jnp.float32):
    """Fused forward pass of GraphSamplingLayer.

    Args:
      emb1, emb2: (N, D) embedding tables (nn.Embedding.weight).
      w1, w2:     (D, D) Linear weights (PyTorch convention: out x in), no bias.
      alpha:      scalar scale.
      out_dtype:  logits dtype (f32 default; bf16 halves output HBM writes).
    Returns:
      logits: (N, N) out_dtype.
    """
    n, d = emb1.shape
    assert emb2.shape == (n, d) and w1.shape == (d, d) and w2.shape == (d, d)

    # ---- padding / tiling ---------------------------------------------------
    d_pad = _round_up(d, 128)                  # lane dim of H1 / rows of H2t

    n_col_pad = _round_up(n, 128)              # logits lane dim: 128-multiple
    tile_n = min(512, n_col_pad)
    n_col_pad = _round_up(n_col_pad, tile_n)

    n_row_pad = _round_up(n, 16)               # sublane dim: 16 suffices (bf16)
    tile_m = min(256, n_row_pad)
    n_row_pad = _round_up(n_row_pad, tile_m)

    f32 = jnp.float32
    # Zero padding is exact here: tanh(0) = 0, padded rows/cols contribute
    # nothing to any contraction; padded logits rows/cols are sliced away.
    e1p = jnp.pad(emb1.astype(f32), ((0, n_row_pad - n), (0, d_pad - d)))
    e2p = jnp.pad(emb2.astype(f32), ((0, n_col_pad - n), (0, d_pad - d)))
    w1p = jnp.pad(w1.astype(f32), ((0, d_pad - d), (0, d_pad - d)))
    w2p = jnp.pad(w2.astype(f32), ((0, d_pad - d), (0, d_pad - d)))
    alpha_arr = jnp.asarray([alpha], dtype=f32)

    # Guard VMEM residency as D grows (v7x: 64 MiB physical / 32 MiB scoped
    # default): single-buffer the grid-invariant weights and raise the limit.
    big_d = d_pad >= 512
    w_spec_kwargs = dict(pipeline_mode=pl.Buffered(1)) if big_d else {}
    vmem_limit = (96 << 20) if big_d else None

    # ---- pass 1a: H1 = alpha * tanh(E1 @ W1.T) ------------------------------
    h1 = pl.pallas_call(
        _proj_tanh_kernel,
        out_shape=jax.ShapeDtypeStruct((n_row_pad, d_pad), jnp.bfloat16),
        grid_spec=pltpu.PrefetchScalarGridSpec(
            num_scalar_prefetch=1,                       # alpha -> SMEM
            grid=(n_row_pad // tile_m,),
            in_specs=[
                pl.BlockSpec((tile_m, d_pad), lambda i, a: (i, 0)),
                pl.BlockSpec((d_pad, d_pad), lambda i, a: (0, 0),
                             **w_spec_kwargs),
            ],
            out_specs=pl.BlockSpec((tile_m, d_pad), lambda i, a: (i, 0)),
        ),
        compiler_params=pltpu.CompilerParams(
            dimension_semantics=("parallel",),
            vmem_limit_bytes=vmem_limit),
        cost_estimate=pl.CostEstimate(
            flops=2 * n_row_pad * d_pad * d_pad,
            transcendentals=n_row_pad * d_pad,
            bytes_accessed=4 * (n_row_pad * d_pad + d_pad * d_pad)
                           + 2 * n_row_pad * d_pad),
    )(alpha_arr, e1p, w1p)

    # ---- pass 1b: H2t = alpha * tanh(W2 @ E2.T) -----------------------------
    h2t = pl.pallas_call(
        _proj_tanh_t_kernel,
        out_shape=jax.ShapeDtypeStruct((d_pad, n_col_pad), jnp.bfloat16),
        grid_spec=pltpu.PrefetchScalarGridSpec(
            num_scalar_prefetch=1,
            grid=(n_col_pad // tile_n,),
            in_specs=[
                pl.BlockSpec((tile_n, d_pad), lambda i, a: (i, 0)),
                pl.BlockSpec((d_pad, d_pad), lambda i, a: (0, 0),
                             **w_spec_kwargs),
            ],
            out_specs=pl.BlockSpec((d_pad, tile_n), lambda i, a: (0, i)),
        ),
        compiler_params=pltpu.CompilerParams(
            dimension_semantics=("parallel",),
            vmem_limit_bytes=vmem_limit),
        cost_estimate=pl.CostEstimate(
            flops=2 * n_col_pad * d_pad * d_pad,
            transcendentals=n_col_pad * d_pad,
            bytes_accessed=4 * (n_col_pad * d_pad + d_pad * d_pad)
                           + 2 * n_col_pad * d_pad),
    )(alpha_arr, e2p, w2p)

    # ---- pass 2: logits = H1 @ H2t ------------------------------------------
    out_bytes = n_row_pad * n_col_pad * jnp.dtype(out_dtype).itemsize
    logits_pad = pl.pallas_call(
        _logits_kernel,
        out_shape=jax.ShapeDtypeStruct((n_row_pad, n_col_pad), out_dtype),
        grid_spec=pltpu.PrefetchScalarGridSpec(
            num_scalar_prefetch=0,
            grid=(n_row_pad // tile_m, n_col_pad // tile_n),
            in_specs=[
                pl.BlockSpec((tile_m, d_pad), lambda i, j: (i, 0)),
                pl.BlockSpec((d_pad, tile_n), lambda i, j: (0, j)),
            ],
            out_specs=pl.BlockSpec((tile_m, tile_n), lambda i, j: (i, j)),
        ),
        compiler_params=pltpu.CompilerParams(
            dimension_semantics=("parallel", "parallel")),
        cost_estimate=pl.CostEstimate(
            flops=2 * n_row_pad * n_col_pad * d_pad,
            transcendentals=0,
            bytes_accessed=2 * (n_row_pad * d_pad + d_pad * n_col_pad)
                           + out_bytes),
    )(h1, h2t)

    return logits_pad[:n, :n]


def _reference_logits(emb1, w1, emb2, w2, alpha):
    h1 = alpha * jnp.tanh(emb1 @ w1.T)
    h2 = alpha * jnp.tanh(emb2 @ w2.T)
    return h1 @ h2.T


if __name__ == "__main__":
    num_features = 16      # N
    embedding_dim = 32     # D
    alpha = 3.0

    key = jax.random.PRNGKey(0)
    k1, k2, k3, k4 = jax.random.split(key, 4)

    # Deterministic synthetic parameters (shapes from __init__):
    #   emb1, emb2 : (num_features, embedding_dim)   -- nn.Embedding weights
    #   w1, w2     : (embedding_dim, embedding_dim)  -- nn.Linear (no bias)
    emb1 = jax.random.normal(k1, (num_features, embedding_dim), dtype=jnp.float32)
    emb2 = jax.random.normal(k2, (num_features, embedding_dim), dtype=jnp.float32)
    w1 = jax.random.normal(k3, (embedding_dim, embedding_dim), dtype=jnp.float32) * 0.1
    w2 = jax.random.normal(k4, (embedding_dim, embedding_dim), dtype=jnp.float32) * 0.1

    logits = graph_sampling_logits(emb1, w1, emb2, w2, alpha)
    logits = jax.block_until_ready(logits)

    ref = _reference_logits(emb1, w1, emb2, w2, alpha)
    assert logits.shape == (num_features, num_features)
    # Projections are f32; only the bounded tanh outputs are bf16 at the MXU
    # boundary of the logits matmul -> tight tolerance.
    assert jnp.allclose(logits, ref, atol=2e-1, rtol=2e-2), "mismatch vs reference"

    # TODO(synk): train/val/test_step (sigmoid + BCE vs prior_adj) are outside
    # forward() and intentionally not implemented here.

    print("KERNEL_OK")
</pallas_src>

<mosaic_0001>
module attributes {stable_mosaic.version = 11 : i64} {
  func.func @_proj_tanh_kernel(%arg0: i32, %arg1: memref<1xf32, #tpu.memory_space<smem>>, %arg2: memref<16x128xf32, #tpu.memory_space<vmem>>, %arg3: memref<128x128xf32, #tpu.memory_space<vmem>>, %arg4: memref<16x128xbf16, #tpu.memory_space<vmem>>) attributes {dimension_semantics = [#tpu.dimension_semantics<parallel>], iteration_bounds = array<i64: 1>, scalar_prefetch = 1 : i64, scratch_operands = 0 : i64, tpu.core_type = #tpu.core_type<tc>, window_params = [{transform_indices = @transform_0, window_bounds = array<i64: 16, 128>}, {pipeline_mode = #tpu.pipeline_mode<synchronous>, transform_indices = @transform_1, window_bounds = array<i64: 128, 128>}, {transform_indices = @transform_2, window_bounds = array<i64: 16, 128>}]} {
    %c0 = arith.constant 0 : index
    %c0_0 = arith.constant 0 : index
    %0 = vector.load %arg2[%c0, %c0_0] : memref<16x128xf32, #tpu.memory_space<vmem>>, vector<16x128xf32>
    %c0_1 = arith.constant 0 : index
    %c0_2 = arith.constant 0 : index
    %1 = vector.load %arg3[%c0_1, %c0_2] : memref<128x128xf32, #tpu.memory_space<vmem>>, vector<128x128xf32>
    %cst = arith.constant dense<0.000000e+00> : vector<16x128xf32>
    %2 = tpu.matmul %0, %1, %cst {dimension_numbers = #tpu.dot_dimension_numbers<[1], [1], [0], [0], [0, 0, 1, 0], [], []>} : vector<16x128xf32>, vector<128x128xf32>, vector<16x128xf32> -> vector<16x128xf32>
    %c0_3 = arith.constant 0 : index
    %3 = memref.load %arg1[%c0_3] : memref<1xf32, #tpu.memory_space<smem>>
    %4 = math.tanh %2 : vector<16x128xf32>
    %5 = vector.broadcast %3 : f32 to vector<16x128xf32>
    %6 = arith.mulf %5, %4 : vector<16x128xf32>
    %7 = arith.truncf %6 : vector<16x128xf32> to vector<16x128xbf16>
    %c0_4 = arith.constant 0 : index
    %c0_5 = arith.constant 0 : index
    %8 = vector.load %arg4[%c0_4, %c0_5] : memref<16x128xbf16, #tpu.memory_space<vmem>>, vector<16x128xbf16>
    tpu.vector_store %arg4[%c0_4, %c0_5], %7 {strides = array<i32>} : memref<16x128xbf16, #tpu.memory_space<vmem>>, vector<16x128xbf16>,
    return
  }
  func.func @transform_0(%arg0: i32, %arg1: memref<1xf32, #tpu.memory_space<smem>>) -> (i32, i32) {
    %c0_i32 = arith.constant 0 : i32
    %c0_i32_0 = arith.constant 0 : i32
    return %arg0, %c0_i32 : i32, i32
  }
  func.func @transform_1(%arg0: i32, %arg1: memref<1xf32, #tpu.memory_space<smem>>) -> (i32, i32) {
    %c0_i32 = arith.constant 0 : i32
    %c0_i32_0 = arith.constant 0 : i32
    %c0_i32_1 = arith.constant 0 : i32
    return %c0_i32, %c0_i32_0 : i32, i32
  }
  func.func @transform_2(%arg0: i32, %arg1: memref<1xf32, #tpu.memory_space<smem>>) -> (i32, i32) {
    %c0_i32 = arith.constant 0 : i32
    %c0_i32_0 = arith.constant 0 : i32
    return %arg0, %c0_i32 : i32, i32
  }
}

</mosaic_0001>

<bundles_post_ra>
// kernel: tpu_custom_call.1
= control target key start
LH: loop header
LB: loop body
LE: loop exit
PB: predicated region body
PF: predicated region fallthrough
CT: control target
= control target key end

     0   :  { %9 = vsyncpa [#allocation5], 0  ;;  %s266_s0 = inlined_call_operand.<no memory space> [shape: f32[1], index: 0, kind: input, shape index: {}]   ;;  %s267_s1 = inlined_call_operand.hbm [shape: f32[16,128], index: 1, kind: input, shape index: {}]   ;;  %s268_s2 = inlined_call_operand.hbm [shape: f32[128,128], index: 2, kind: input, shape index: {}]   ;;  %s269_s3 = inlined_call_operand.hbm [shape: bf16[16,128], index: 3, kind: output, shape index: {}]  }
   0x1   :  { %10 = vsyncpa [#allocation8], 0 }
   0x2   :  { %11 = vsyncpa [#allocation6], 0  ;;  %s16_s14 = sshll.u32 %s267_s1, 4  ;;  %s227_s15 = smov [#allocation4]   ;;  %s17_s14 = int_to_ptr.hbm [resolvable:$true] %s16_s14 }
   0x3   :  { %s18_s16 = sshll.u32 %s227_s15, 4  ;;  %s29_s19 = sshll.u32 %s268_s2, 4  ;;  %s19_s16 = int_to_ptr.vmem [resolvable:$true] %s18_s16  ;;  %s30_s19 = int_to_ptr.hbm [resolvable:$true] %s29_s19 }
   0x4   :  { %s228_s20 = smov 128   ;;  %s229_s21 = smov 8  }
   0x5   :  { %24 = dma.hbm_to_vmem [thread:$0]  %s17_s14, 256, %s19_s16, [#allocation5], %s228_s20, %s228_s20, %s229_s21  }
   0x6   :  { %s230_s22 = smov [#allocation7]  }
   0x7   :  { %s31_s23 = sshll.u32 %s230_s22, 4  ;;  %s32_s23 = int_to_ptr.vmem [resolvable:$true] %s31_s23 }
   0x8   :  { %37 = dma.hbm_to_vmem [thread:$0]  %s30_s19, 2048, %s32_s23, [#allocation8], %s228_s20, %s228_s20, %s229_s21  }
   0x9   :  { %221 = dma.done.wait [#allocation5], 256  }
   0xa   :  { %222 = vsyncadd [#allocation5], 4294967040 }
   0xb   :  { %223 = dma.done.wait [#allocation8], 2048  }
   0xc   :  { %224 = vsyncadd [#allocation8], 4294965248  ;;  %v63_v0 = vld [vmem:[#allocation7 + $0x78] sm:$0xff]  ;;  %v62_v1 = vld [vmem:[#allocation7 + $0x70] sm:$0xff]  ;;  %v90_v20 = vstv %s266_s0  ;;  %s231_s24 = smov [#allocation9]   ;;  %s103_s28 = sshll.u32 %s269_s3, 4  ;;  %s104_s28 = int_to_ptr.hbm [resolvable:$true] %s103_s28 }
   0xd   :  { %64 = vmatpush.xpose.msra.mxu0 %v63_v0  ;;  %122 = vmatpush.xpose.msra.mxu1 %v63_v0  ;;  %v61_v2 = vld [vmem:[#allocation7 + $0x68] sm:$0xff]  ;;  %v60_v3 = vld [vmem:[#allocation7 + $0x60] sm:$0xff]  ;;  %v59_v4 = vld [vmem:[#allocation7 + $0x58] sm:$0xff]  ;;  %s101_s25 = sshll.u32 %s231_s24, 4  ;;  %s232_s29 = smov 64   ;;  %s102_s25 = int_to_ptr.vmem [resolvable:$true] %s101_s25 }
   0xe   :  { %v58_v5 = vld [vmem:[#allocation7 + $0x50] sm:$0xff]  ;;  %v57_v6 = vld [vmem:[#allocation7 + $0x48] sm:$0xff]  ;;  %v56_v7 = vld [vmem:[#allocation7 + $0x40] sm:$0xff]  ;;  %s233_s30 = smov 4  }
   0xf   :  { %v55_v8 = vld [vmem:[#allocation7 + $0x38] sm:$0xff]  ;;  %v54_v9 = vld [vmem:[#allocation7 + $0x30] sm:$0xff]  ;;  %v53_v10 = vld [vmem:[#allocation7 + $0x28] sm:$0xff] }
  0x10   :  { %v52_v11 = vld [vmem:[#allocation7 + $0x20] sm:$0xff]  ;;  %v51_v12 = vld [vmem:[#allocation7 + $0x18] sm:$0xff]  ;;  %v50_v13 = vld [vmem:[#allocation7 + $0x10] sm:$0xff] }
  0x11   :  { %65 = vmatpush.xpose.msra.mxu0 %v62_v1  ;;  %123 = vmatpush.xpose.msra.mxu1 %v62_v1  ;;  %v49_v14 = vld [vmem:[#allocation7 + $0x8] sm:$0xff]  ;;  %v48_v15 = vld [vmem:[#allocation7] sm:$0xff]  ;;  %v46_v16 = vld [vmem:[#allocation4] sm:$0xff] }
  0x12   :  { %v47_v17 = vld [vmem:[#allocation4 + $0x8] sm:$0xff] }
  0x15   :  { %66 = vmatpush.xpose.msra.mxu0 %v61_v2  ;;  %124 = vmatpush.xpose.msra.mxu1 %v61_v2 }
  0x19   :  { %67 = vmatpush.xpose.msra.mxu0 %v60_v3  ;;  %125 = vmatpush.xpose.msra.mxu1 %v60_v3 }
  0x1d   :  { %68 = vmatpush.xpose.msra.mxu0 %v59_v4  ;;  %126 = vmatpush.xpose.msra.mxu1 %v59_v4 }
  0x21   :  { %69 = vmatpush.xpose.msra.mxu0 %v58_v5  ;;  %127 = vmatpush.xpose.msra.mxu1 %v58_v5 }
  0x25   :  { %70 = vmatpush.xpose.msra.mxu0 %v57_v6  ;;  %128 = vmatpush.xpose.msra.mxu1 %v57_v6 }
  0x29   :  { %71 = vmatpush.xpose.msra.mxu0 %v56_v7  ;;  %129 = vmatpush.xpose.msra.mxu1 %v56_v7 }
  0x2d   :  { %72 = vmatpush.xpose.msra.mxu0 %v55_v8  ;;  %130 = vmatpush.xpose.msra.mxu1 %v55_v8 }
  0x31   :  { %73 = vmatpush.xpose.msra.mxu0 %v54_v9  ;;  %131 = vmatpush.xpose.msra.mxu1 %v54_v9 }
  0x35   :  { %74 = vmatpush.xpose.msra.mxu0 %v53_v10  ;;  %132 = vmatpush.xpose.msra.mxu1 %v53_v10 }
  0x39   :  { %75 = vmatpush.xpose.msra.mxu0 %v52_v11  ;;  %133 = vmatpush.xpose.msra.mxu1 %v52_v11 }
  0x3d   :  { %76 = vmatpush.xpose.msra.mxu0 %v51_v12  ;;  %134 = vmatpush.xpose.msra.mxu1 %v51_v12 }
  0x41   :  { %77 = vmatpush.xpose.msra.mxu0 %v50_v13  ;;  %135 = vmatpush.xpose.msra.mxu1 %v50_v13 }
  0x45   :  { %78 = vmatpush.xpose.msra.mxu0 %v49_v14  ;;  %136 = vmatpush.xpose.msra.mxu1 %v49_v14 }
  0x49   :  { %79 = vmatpush.xpose.msra.mxu0 %v48_v15  ;;  %137 = vmatpush.xpose.msra.mxu1 %v48_v15 }
  0x4c   :  { %80 = vmatmul.f32.vlgmr.msra.gmra.mxu0 %v46_v16  ;;  %83 = vmatmul.f32.vlgmr.msra.gmra.mxu1 %v47_v17 }
  0xc9   :  { %v81_v18 = vpop.f32.mrf.mxu0  ;;  %v84_v19 = vpop.f32.mrf.mxu1 }
  0xca   :  { %145 = vtanh.f32 %v81_v18 }
  0xcb   :  { %147 = vtanh.f32 %v84_v19 }
  0xd0   :  { %v146_v21 = vpop.eup %145 }
  0xd1   :  { %v148_v22 = vpop.eup %147  ;;  %v91_v23 = vmul.f32 %v146_v21, %v90_v20 }
  0xd2   :  { %v92_v24 = vmul.f32 %v148_v22, %v90_v20 }
  0xd4   :  { %v120_v25 = vpack.c.bf16 %v92_v24, %v91_v23 }
  0xd6   :  { %121 = vst [vmem:[#allocation9] sm:$0xff] %v120_v25  }
  0xd7   :  { %109 = dma.vmem_to_hbm [thread:$0]  %s102_s25, 128, %s104_s28, [#allocation6], %s232_s29, %s232_s29, %s233_s30  }
  0xd8   :  { %225 = dma.done.wait [#allocation6], 128  }
  0xd9   :  { %226 = vsyncadd [#allocation6], 4294967168 }
  0xda   :  { %114 = vsyncpa [#allocation5], 1 }
  0xdb   :  { %115 = vsyncpa [#allocation8], 1 }
  0xdc   :  { %116 = vsyncpa [#allocation6], 1 }

</bundles_post_ra>
